<compile_context>
chip_gen: v6e
topology: v6e:2x2x1
jax: 0.10.0
libtpu: 0.0.40
codegen_flags: <defaults>
</compile_context>

<pallas_src>
import functools

import jax
import jax.numpy as jnp
import numpy as np
from jax import lax
from jax.experimental import pallas as pl
from jax.experimental.pallas import tpu as pltpu


def _conv_in_relu_kernel(w_ref, x_ref, o_ref, *, eps):
    # w_ref: (Cout, Cin) float32
    # x_ref: (1, Cin, N) float32   -- one batch element, spatial flattened
    # o_ref: (1, Cout, N) float32
    x = x_ref[0]                                    # (Cin, N)
    w = w_ref[...]                                  # (Cout, Cin)

    # 1x1x1 conv == channel matmul on the MXU, accumulate in f32.
    y = jnp.dot(w, x, preferred_element_type=jnp.float32)   # (Cout, N)

    # InstanceNorm3d: per output channel, biased mean/var over all voxels.
    inv_n = jnp.float32(1.0 / y.shape[-1])
    mean = jnp.sum(y, axis=-1, keepdims=True) * inv_n        # (Cout, 1)
    yc = y - mean
    var = jnp.sum(yc * yc, axis=-1, keepdims=True) * inv_n   # (Cout, 1)
    scale = lax.rsqrt(var + jnp.float32(eps))                # (Cout, 1)

    # Normalize + (dropout = identity at inference) + ReLU, fused.
    o_ref[0] = jnp.maximum(yc * scale, jnp.float32(0.0)).astype(o_ref.dtype)


def conv_in_relu3d(x, weight, *, eps=1e-5):
    """x: (B, Cin, H, W, D) float32, weight: (Cout, Cin) float32
    -> (B, Cout, H, W, D) float32."""
    b, cin, h, w, d = x.shape
    cout = weight.shape[0]
    assert weight.shape == (cout, cin)
    n = h * w * d

    # Free reshape (no transpose): layout is already (B, C, spatial...).
    xf = x.reshape(b, cin, n).astype(jnp.float32)
    wf = weight.astype(jnp.float32)

    out = pl.pallas_call(
        functools.partial(_conv_in_relu_kernel, eps=eps),
        out_shape=jax.ShapeDtypeStruct((b, cout, n), jnp.float32),
        grid=(b,),
        in_specs=[
            pl.BlockSpec((cout, cin), lambda i: (0, 0)),      # weight (resident)
            pl.BlockSpec((1, cin, n), lambda i: (i, 0, 0)),   # one batch slab
        ],
        out_specs=pl.BlockSpec((1, cout, n), lambda i: (i, 0, 0)),
        compiler_params=pltpu.CompilerParams(
            dimension_semantics=("parallel",),
            vmem_limit_bytes=32 * 1024 * 1024,
        ),
    )(wf, xf)
    return out.reshape(b, cout, h, w, d)


def _reference(x, weight, *, eps=1e-5):
    """Pure-JAX reference mirroring the PyTorch module at inference."""
    y = jnp.einsum("oc,bchwd->bohwd", weight, x)
    mean = y.mean(axis=(2, 3, 4), keepdims=True)
    var = ((y - mean) ** 2).mean(axis=(2, 3, 4), keepdims=True)  # biased var
    yn = (y - mean) / jnp.sqrt(var + eps)
    return jnp.maximum(yn, 0.0)


if __name__ == "__main__":
    key = jax.random.PRNGKey(0)
    k_x, k_w = jax.random.split(key)

    B, CIN, COUT = 2, 8, 16
    H = W = D = 16                       # N = 4096 voxels (lane-dense output)

    x = jax.random.normal(k_x, (B, CIN, H, W, D), dtype=jnp.float32)
    # Conv3d default init scale ~ 1/sqrt(fan_in); exact init is irrelevant here.
    weight = jax.random.normal(k_w, (COUT, CIN), dtype=jnp.float32) * (1.0 / CIN) ** 0.5

    y = conv_in_relu3d(x, weight)
    jax.block_until_ready(y)

    y_ref = _reference(x, weight)
    assert y.shape == (B, COUT, H, W, D), y.shape
    np.testing.assert_allclose(np.asarray(y), np.asarray(y_ref),
                               rtol=1e-4, atol=1e-4)
    print("KERNEL_OK")
</pallas_src>

<mosaic_0001>
module attributes {stable_mosaic.version = 11 : i64} {
  func.func @_conv_in_relu_kernel(%arg0: i32, %arg1: memref<16x8xf32, #tpu.memory_space<vmem>>, %arg2: memref<1x8x4096xf32, #tpu.memory_space<vmem>>, %arg3: memref<1x16x4096xf32, #tpu.memory_space<vmem>>) attributes {dimension_semantics = [#tpu.dimension_semantics<parallel>], iteration_bounds = array<i64: 2>, scalar_prefetch = 0 : i64, scratch_operands = 0 : i64, tpu.core_type = #tpu.core_type<tc>, window_params = [{pipeline_mode = #tpu.pipeline_mode<synchronous>, transform_indices = @transform_0, window_bounds = array<i64: 16, 8>}, {transform_indices = @transform_1, window_bounds = array<i64: 1, 8, 4096>}, {transform_indices = @transform_2, window_bounds = array<i64: 1, 16, 4096>}]} {
    %c0 = arith.constant 0 : index
    %c0_0 = arith.constant 0 : index
    %c0_1 = arith.constant 0 : index
    %0 = vector.load %arg2[%c0, %c0_0, %c0_1] : memref<1x8x4096xf32, #tpu.memory_space<vmem>>, vector<1x8x4096xf32>
    %1 = vector.shape_cast %0 : vector<1x8x4096xf32> to vector<8x4096xf32>
    %c0_2 = arith.constant 0 : index
    %c0_3 = arith.constant 0 : index
    %2 = vector.load %arg1[%c0_2, %c0_3] : memref<16x8xf32, #tpu.memory_space<vmem>>, vector<16x8xf32>
    %cst = arith.constant dense<0.000000e+00> : vector<16x4096xf32>
    %3 = tpu.matmul %2, %1, %cst {dimension_numbers = #tpu.dot_dimension_numbers<[1], [0], [0], [1], [0, 0, 1, 1], [], []>} : vector<16x8xf32>, vector<8x4096xf32>, vector<16x4096xf32> -> vector<16x4096xf32>
    %cst_4 = arith.constant dense<0.000000e+00> : vector<16xf32>
    %4 = vector.multi_reduction <add>, %3, %cst_4 [1] : vector<16x4096xf32> to vector<16xf32>
    %5 = vector.shape_cast %4 : vector<16xf32> to vector<16x1xf32>
    %cst_5 = arith.constant 2.44140625E-4 : f32
    %6 = vector.broadcast %cst_5 : f32 to vector<16x1xf32>
    %7 = arith.mulf %5, %6 : vector<16x1xf32>
    %8 = vector.broadcast %7 : vector<16x1xf32> to vector<16x4096xf32>
    %9 = arith.subf %3, %8 : vector<16x4096xf32>
    %10 = arith.mulf %9, %9 : vector<16x4096xf32>
    %cst_6 = arith.constant dense<0.000000e+00> : vector<16xf32>
    %11 = vector.multi_reduction <add>, %10, %cst_6 [1] : vector<16x4096xf32> to vector<16xf32>
    %12 = vector.shape_cast %11 : vector<16xf32> to vector<16x1xf32>
    %cst_7 = arith.constant 2.44140625E-4 : f32
    %13 = vector.broadcast %cst_7 : f32 to vector<16x1xf32>
    %14 = arith.mulf %12, %13 : vector<16x1xf32>
    %cst_8 = arith.constant 9.99999974E-6 : f32
    %15 = vector.broadcast %cst_8 : f32 to vector<16x1xf32>
    %16 = arith.addf %14, %15 : vector<16x1xf32>
    %17 = math.rsqrt %16 : vector<16x1xf32>
    %18 = vector.broadcast %17 : vector<16x1xf32> to vector<16x4096xf32>
    %19 = arith.mulf %9, %18 : vector<16x4096xf32>
    %cst_9 = arith.constant 0.000000e+00 : f32
    %20 = vector.broadcast %cst_9 : f32 to vector<16x4096xf32>
    %21 = arith.maximumf %19, %20 : vector<16x4096xf32>
    %c0_10 = arith.constant 0 : index
    %c0_11 = arith.constant 0 : index
    %c0_12 = arith.constant 0 : index
    %22 = vector.load %arg3[%c0_10, %c0_11, %c0_12] : memref<1x16x4096xf32, #tpu.memory_space<vmem>>, vector<1x16x4096xf32>
    %23 = vector.shape_cast %22 : vector<1x16x4096xf32> to vector<16x4096xf32>
    %24 = vector.shape_cast %21 : vector<16x4096xf32> to vector<1x16x4096xf32>
    tpu.vector_store %arg3[%c0_10, %c0_11, %c0_12], %24 {strides = array<i32>} : memref<1x16x4096xf32, #tpu.memory_space<vmem>>, vector<1x16x4096xf32>,
    return
  }
  func.func @transform_0(%arg0: i32) -> (i32, i32) {
    %c0_i32 = arith.constant 0 : i32
    %c0_i32_0 = arith.constant 0 : i32
    %c0_i32_1 = arith.constant 0 : i32
    return %c0_i32, %c0_i32_0 : i32, i32
  }
  func.func @transform_1(%arg0: i32) -> (i32, i32, i32) {
    %c0_i32 = arith.constant 0 : i32
    %c0_i32_0 = arith.constant 0 : i32
    %c0_i32_1 = arith.constant 0 : i32
    return %arg0, %c0_i32, %c0_i32_0 : i32, i32, i32
  }
  func.func @transform_2(%arg0: i32) -> (i32, i32, i32) {
    %c0_i32 = arith.constant 0 : i32
    %c0_i32_0 = arith.constant 0 : i32
    %c0_i32_1 = arith.constant 0 : i32
    return %arg0, %c0_i32, %c0_i32_0 : i32, i32, i32
  }
}

</mosaic_0001>

<bundles_post_ra>
// kernel: tpu_custom_call.1
= control target key start
LH: loop header
LB: loop body
LE: loop exit
PB: predicated region body
PF: predicated region fallthrough
CT: control target
= control target key end

     0   :  { %7 = vsyncpa [#allocation3], 0  ;;  %s3382_s0 = inlined_call_operand.vmem [shape: f32[16,8], index: 0, kind: input, shape index: {}]   ;;  %s3383_s1 = inlined_call_operand.hbm [shape: f32[2,8,4096], index: 1, kind: input, shape index: {}]   ;;  %s3384_s2 = inlined_call_operand.hbm [shape: f32[2,16,4096], index: 2, kind: output, shape index: {}]  }
   0x1   :  { %9 = vsyncpa [#allocation3 + $0x1], 0 }
   0x2   :  { %10 = vsyncpa [#allocation4], 0 }
   0x3   :  { %12 = vsyncpa [#allocation4 + $0x1], 0  ;;  %s2195_s9 = smov 0   ;;  %s2197_s10 = smov 0  }
   0x4   :  { %s2199_s11 = smov 0   ;;  %s2201_s12 = smov 0  }
   0x5 LB: > { %s2216_s13 = sadd.s32 4294967295, %s2173_s12   ;;  %s1980_s14 = sadd.s32 4294967294, %s2173_s12   ;;  %s2173_s12 = sphi %s2201_s12, %s3492_s12   ;;  %s2169_s11 = sphi %s2199_s11, %s3491_s11   ;;  %s2165_s10 = sphi %s2197_s10, %s3490_s10   ;;  %s2161_s9 = sphi %s2195_s9, %s3489_s9  }
   0x6   : > { %s2220_s15 = sadd.s32 1, %s2173_s12   ;;  %s46_s16 = sadd.s32 1, %s2169_s11 }
   0x7   : > { %s43_s17 = ssub.s32 %s2173_s12, %s2220_s15  ;;  %p53_p0 = scmp.ne.s32.totalorder %s2169_s11, %s2165_s10 }
   0x8   : > { %p44_p1 = scmp.eq.s32.totalorder %s43_s17, 0  ;;  %p54_p2 = scmp.eq.s32.totalorder %s2173_s12, 0 }
   0x9   : > { %p59_p3 = scmp.ne.s32.totalorder %s2165_s10, %s2161_s9  ;;  %p60_p4 = scmp.eq.s32.totalorder %s2216_s13, 0 }
   0xa   : > { %s2232_s18 = scalar_select %p44_p1, %s2169_s11, %s46_s16  }
   0xb   : > { %p2234_p5 = por %p54_p2, %p53_p0  ;;  %p2238_p6 = por %p60_p4, %p59_p3 }
   0xc   : > { %p83_p7 = scmp.eq.s32.totalorder %s2216_s13, 1  ;;  %p89_p8 = scmp.eq.s32.totalorder %s1980_s14, 1 }
   0xd   : > { %s3415_s20 = scalar_select %p2238_p6, 1, 0 }
   0xe   : > { %p2040_p10 = scmp.lt.s32.totalorder %s2173_s12, 2  ;;  %p2245_p11 = por %p83_p7, %p53_p0 }
   0xf   : > { %p2249_p12 = por %p89_p8, %p59_p3  ;;  %s112_s23 = sand.u32 1, %s2169_s11  }
  0x10   : > { %s3416_s21 = scalar_select %p2245_p11, 1, 0 }
  0x11   : > { %s3417_s22 = scalar_select %p2249_p12, 1, 0 }
  0x12   : > { %s2026_s24 = sshll.u32 %s2173_s12, 12  ;;  %s1983_s25 = sshll.u32 %s112_s23, 8 }
  0x13   : > { %s2258_s28 = scalar_lea.hbm %s3383_s1, %s2026_s24  ;;  %s116_s29 = scalar_lea.vmem [#allocation2], %s1983_s25 }
  0x14   : > { %s124_s30 = sshll.u32 %s116_s29, 4  ;;  %p2262_p13 = pnand %p2040_p10, %p2234_p5  ;;  %s2266_s30 = int_to_ptr.vmem [resolvable:$true] %s124_s30 }
  0x15   : > { %s113_s4 = scalar_lea.sflag [#allocation3], %s112_s23  ;;  %s2081_s5 = scalar_lea.hbm %s2258_s28, 4096 }
  0x16   : > { %p2082_p2 = scmp.ne.s32.totalorder %s2258_s28, %s2081_s5  ;;  %p2083_p3 = pneg %p2262_p13 }
  0x17   : > { %s2086_s8 = scalar_lea.hbm %s3383_s1, 8192  ;;  %p2087_p5 = scmp.lt.s32.totalorder %s2258_s28, %s3383_s1 }
  0x18   : > { %p2084_p4 = pnand %p2083_p3, %p2082_p2  ;;  %p2088_p8 = scmp.lt.s32.totalorder %s2086_s8, %s2081_s5 }
  0x1a   : > { %p2085_p7 = pneg %p2084_p4  ;;  %p2089_p10 = por %p2088_p8, %p2087_p5 }
  0x1c   : > { %p2090_p9 = pnand %p2089_p10, %p2085_p7 }
  0x1e   : > { %2093 = shalt.err (!%p2090_p9)
}
  0x1f   : > { %s2094_s17 = scalar_lea.vmem %s2266_s30, 4096  ;;  %s2175_s19 = smov [#allocation2]  }
  0x20   : > { %p2095_p0 = scmp.ne.s32.totalorder %s2266_s30, %s2094_s17  ;;  %s2099_s23 = sshll.u32 %s2175_s19, 4  ;;  %s2100_s23 = int_to_ptr.vmem [resolvable:$false] %s2099_s23 }
  0x21   : > { %s2101_s24 = scalar_lea.vmem %s2100_s23, 8192  ;;  %p2102_p4 = scmp.lt.s32.totalorder %s2266_s30, %s2100_s23 }
  0x22   : > { %p2097_p1 = pnand %p2095_p0, %p2083_p3  ;;  %p2103_p12 = scmp.lt.s32.totalorder %s2101_s24, %s2094_s17 }
  0x24   : > { %p2098_p2 = pneg %p2097_p1  ;;  %p2104_p11 = por %p2103_p12, %p2102_p4 }
  0x26   : > { %p2105_p6 = pnand %p2104_p11, %p2098_p2 }
  0x28   : > { %2108 = shalt.err (!%p2105_p6)
}
  0x29   : > { %2035 = dma.hbm_to_vmem [thread:$0]  (!%p2262_p13), %s2258_s28, 4096, %s2266_s30, %s113_s4  }
  0x2a   : > { %p3419_p9 = scmp.lt.s32.totalorder %s2173_s12, 3  ;;  %p3420_p7 = scmp.ge.s32.totalorder %s2173_s12, 1 }
  0x2c   : > { %p130_p0 = pnand %p3420_p7, %p3419_p9 }
  0x2e   : > { %133 = sbr.rel (%p130_p0) target bundleno = 740 (0x2e4), region = 28 }
  0x33   : > { %s2293_s25 = sand.u32 1, %s2165_s10   ;;  %p3421_p6 = scmp.ne.s32.totalorder %s3415_s20, 0 }
  0x34   : > { %s1987_s26 = sshll.u32 %s2293_s25, 8  ;;  %s136_s27 = scalar_lea.sflag [#allocation3], %s2293_s25 }
  0x35   : > { %s2297_s29 = scalar_lea.vmem [#allocation2], %s1987_s26 }
  0x36   : > { %2152 = dma.done.wait (%p3421_p6), %s136_s27, 4096  }
  0x37   : > { %2154 = vsyncadd (%p3421_p6), %s136_s27, 4294963200  ;;  %v2176_v0 = vmov 0.0   ;;  %v161_v1 = vld [vmem:[%s2297_s29 + $0x8] sm:$0xff]  ;;  %v160_v2 = vld [vmem:[%s2297_s29] sm:$0xff]  ;;  %vm194_vm0 = vcmask 64512   ;;  %s1988_s4 = sshll.u32 %s2293_s25, 9 }
  0x38   : > { %265 = vmatprep.mubr.f32.mxu0 %v2176_v0  ;;  %342 = vmatprep.mubr.f32.mxu1 %v2176_v0  ;;  %v2310_v3 = vld [vmem:[%s3382_s0] sm:$0xff]  ;;  %v165_v4 = vld [vmem:[%s2297_s29 + $0x28] sm:$0xff]  ;;  %v163_v5 = vld [vmem:[%s2297_s29 + $0x18] sm:$0xff]  ;;  %s3134_s5 = scalar_lea.vmem [#allocation5], %s1988_s4  ;;  %s2027_s6 = sshll.u32 %s2216_s13, 13 }
  0x39   : > { %231 = vmatprep.subr.mxu0 %v161_v1  ;;  %v164_v6 = vld [vmem:[%s2297_s29 + $0x20] sm:$0xff]  ;;  %308 = vmatprep.subr.mxu1 %v163_v5  ;;  %v162_v7 = vld [vmem:[%s2297_s29 + $0x10] sm:$0xff]  ;;  %v167_v8 = vld [vmem:[%s2297_s29 + $0x38] sm:$0xff]  ;;  %s1907_s7 = sshll.u32 %s3134_s5, 4  ;;  %s3321_s14 = scalar_lea.hbm %s3384_s2, %s2027_s6  ;;  %s3323_s7 = int_to_ptr.vmem [resolvable:$true] %s1907_s7 }
  0x3a   : > { %232 = vmatpush1.msra.mxu0 %v160_v2  ;;  %309 = vmatpush1.msra.mxu1 %v162_v7  ;;  %v2322_v9 = vld [vmem:[%s3382_s0 + $0x8] sm:$0xff]  ;;  %v166_v10 = vld [vmem:[%s2297_s29 + $0x30] sm:$0xff]  ;;  %v171_v12 = vld [vmem:[%s2297_s29 + $0x58] sm:$0xff]  ;;  %s1894_s16 = scalar_lea.sflag [#allocation4], %s2293_s25  ;;  %s2109_s17 = scalar_lea.vmem %s3323_s7, 8192 }
  0x3b   : > { %1989 = vmatmul.mubr.msk.f32.vlgmr.msra.gmra.mxu0 %vm194_vm0, %v2310_v3  ;;  %385 = vmatprep.subr.mxu0 %v165_v4  ;;  %v169_v11 = vld [vmem:[%s2297_s29 + $0x48] sm:$0xff]  ;;  %v168_v13 = vld [vmem:[%s2297_s29 + $0x40] sm:$0xff]  ;;  %v170_v15 = vld [vmem:[%s2297_s29 + $0x50] sm:$0xff]  ;;  %p2110_p11 = scmp.ne.s32.totalorder %s3323_s7, %s2109_s17  ;;  %p3486_p12 = scmp.ne.s32.totalorder %s3416_s21, 0 }
  0x3c   : > { %386 = vmatpush1.msra.mxu0 %v164_v6  ;;  %271 = vmatprep.mubr.f32.mxu0 %v2176_v0  ;;  %v173_v14 = vld [vmem:[%s2297_s29 + $0x68] sm:$0xff]  ;;  %v175_v16 = vld [vmem:[%s2297_s29 + $0x78] sm:$0xff]  ;;  %v172_v17 = vld [vmem:[%s2297_s29 + $0x60] sm:$0xff]  ;;  %s2177_s19 = smov [#allocation5]  }
  0x3d   : > { %1991 = vmatmul.mubr.msk.f32.vlgmr.msra.gmra.mxu1 %vm194_vm0, %v2310_v3  ;;  %462 = vmatprep.subr.mxu1 %v167_v8  ;;  %v177_v18 = vld [vmem:[%s2297_s29 + $0x88] sm:$0xff]  ;;  %v174_v19 = vld [vmem:[%s2297_s29 + $0x70] sm:$0xff]  ;;  %v179_v20 = vld [vmem:[%s2297_s29 + $0x98] sm:$0xff]  ;;  %p2111_p13 = pnand %p2110_p11, %p3486_p12  ;;  %s2113_s23 = sshll.u32 %s2177_s19, 4  ;;  %s2114_s23 = int_to_ptr.vmem [resolvable:$false] %s2113_s23 }
  0x3e   : > { %348 = vmatprep.mubr.f32.mxu1 %v2176_v0  ;;  %463 = vmatpush1.msra.mxu1 %v166_v10  ;;  %v176_v21 = vld [vmem:[%s2297_s29 + $0x80] sm:$0xff]  ;;  %v181_v22 = vld [vmem:[%s2297_s29 + $0xa8] sm:$0xff]  ;;  %v178_v23 = vld [vmem:[%s2297_s29 + $0x90] sm:$0xff]  ;;  %s2115_s24 = scalar_lea.vmem %s2114_s23, 16384  ;;  %p2116_p3 = scmp.lt.s32.totalorder %s3323_s7, %s2114_s23 }
  0x3f   : > { %1990 = vmatmul.mubr.msk.f32.gmra.mxu0 %vm194_vm0, %v2322_v9  ;;  %539 = vmatprep.subr.mxu0 %v169_v11  ;;  %v183_v24 = vld [vmem:[%s2297_s29 + $0xb8] sm:$0xff]  ;;  %v180_v25 = vld [vmem:[%s2297_s29 + $0xa0] sm:$0xff]  ;;  %v185_v26 = vld [vmem:[%s2297_s29 + $0xc8] sm:$0xff]  ;;  %p2112_p1 = pneg %p2111_p13  ;;  %p2117_p5 = scmp.lt.s32.totalorder %s2115_s24, %s2109_s17 }
  0x40   : > { %419 = vmatprep.mubr.f32.mxu0 %v2176_v0  ;;  %616 = vmatprep.subr.mxu1 %v171_v12  ;;  %v182_v27 = vld [vmem:[%s2297_s29 + $0xb0] sm:$0xff]  ;;  %v187_v28 = vld [vmem:[%s2297_s29 + $0xd8] sm:$0xff]  ;;  %v184_v29 = vld [vmem:[%s2297_s29 + $0xc0] sm:$0xff] }
  0x41   : > { %1992 = vmatmul.mubr.msk.f32.gmra.mxu1 %vm194_vm0, %v2322_v9  ;;  %v189_v30 = vld [vmem:[%s2297_s29 + $0xe8] sm:$0xff]  ;;  %v186_v31 = vld [vmem:[%s2297_s29 + $0xd0] sm:$0xff]  ;;  %v191_v32 = vld [vmem:[%s2297_s29 + $0xf8] sm:$0xff]  ;;  %p2118_p8 = por %p2117_p5, %p2116_p3 }
  0x42   : > { %496 = vmatprep.mubr.f32.mxu1 %v2176_v0  ;;  %v188_v33 = vld [vmem:[%s2297_s29 + $0xe0] sm:$0xff]  ;;  %v190_v34 = vld [vmem:[%s2297_s29 + $0xf0] sm:$0xff] }
  0x43   : > { %1993 = vmatmul.mubr.msk.f32.vlgmr.msra.gmra.mxu0 %vm194_vm0, %v2310_v3  ;;  %p2119_p10 = pnand %p2118_p8, %p2112_p1 }
  0x44   : > { %540 = vmatpush1.msra.mxu0 %v168_v13  ;;  %425 = vmatprep.mubr.f32.mxu0 %v2176_v0 }
  0x45   : > { %1995 = vmatmul.mubr.msk.f32.vlgmr.msra.gmra.mxu1 %vm194_vm0, %v2310_v3  ;;  %693 = vmatprep.subr.mxu0 %v173_v14 }
  0x46   : > { %617 = vmatpush1.msra.mxu1 %v170_v15  ;;  %502 = vmatprep.mubr.f32.mxu1 %v2176_v0 }
  0x47   : > { %1994 = vmatmul.mubr.msk.f32.gmra.mxu0 %vm194_vm0, %v2322_v9  ;;  %770 = vmatprep.subr.mxu1 %v175_v16 }
  0x48   : > { %573 = vmatprep.mubr.f32.mxu0 %v2176_v0 }
  0x49   : > { %1996 = vmatmul.mubr.msk.f32.gmra.mxu1 %vm194_vm0, %v2322_v9 }
  0x4a   : > { %650 = vmatprep.mubr.f32.mxu1 %v2176_v0 }
  0x4b   : > { %1997 = vmatmul.mubr.msk.f32.vlgmr.msra.gmra.mxu0 %vm194_vm0, %v2310_v3 }
  0x4c   : > { %694 = vmatpush1.msra.mxu0 %v172_v17  ;;  %579 = vmatprep.mubr.f32.mxu0 %v2176_v0 }
  0x4d   : > { %1999 = vmatmul.mubr.msk.f32.vlgmr.msra.gmra.mxu1 %vm194_vm0, %v2310_v3  ;;  %847 = vmatprep.subr.mxu0 %v177_v18 }
  0x4e   : > { %771 = vmatpush1.msra.mxu1 %v174_v19  ;;  %656 = vmatprep.mubr.f32.mxu1 %v2176_v0 }
  0x4f   : > { %1998 = vmatmul.mubr.msk.f32.gmra.mxu0 %vm194_vm0, %v2322_v9  ;;  %924 = vmatprep.subr.mxu1 %v179_v20 }
  0x50   : > { %727 = vmatprep.mubr.f32.mxu0 %v2176_v0 }
  0x51   : > { %2000 = vmatmul.mubr.msk.f32.gmra.mxu1 %vm194_vm0, %v2322_v9 }
  0x52   : > { %804 = vmatprep.mubr.f32.mxu1 %v2176_v0 }
  0x53   : > { %2001 = vmatmul.mubr.msk.f32.vlgmr.msra.gmra.mxu0 %vm194_vm0, %v2310_v3 }
  0x54   : > { %848 = vmatpush1.msra.mxu0 %v176_v21  ;;  %733 = vmatprep.mubr.f32.mxu0 %v2176_v0 }
  0x55   : > { %2003 = vmatmul.mubr.msk.f32.vlgmr.msra.gmra.mxu1 %vm194_vm0, %v2310_v3  ;;  %1001 = vmatprep.subr.mxu0 %v181_v22 }
  0x56   : > { %925 = vmatpush1.msra.mxu1 %v178_v23  ;;  %810 = vmatprep.mubr.f32.mxu1 %v2176_v0 }
  0x57   : > { %2002 = vmatmul.mubr.msk.f32.gmra.mxu0 %vm194_vm0, %v2322_v9  ;;  %1078 = vmatprep.subr.mxu1 %v183_v24 }
  0x58   : > { %881 = vmatprep.mubr.f32.mxu0 %v2176_v0 }
  0x59   : > { %2004 = vmatmul.mubr.msk.f32.gmra.mxu1 %vm194_vm0, %v2322_v9 }
  0x5a   : > { %958 = vmatprep.mubr.f32.mxu1 %v2176_v0 }
  0x5b   : > { %2005 = vmatmul.mubr.msk.f32.vlgmr.msra.gmra.mxu0 %vm194_vm0, %v2310_v3 }
  0x5c   : > { %1002 = vmatpush1.msra.mxu0 %v180_v25  ;;  %887 = vmatprep.mubr.f32.mxu0 %v2176_v0 }
  0x5d   : > { %2007 = vmatmul.mubr.msk.f32.vlgmr.msra.gmra.mxu1 %vm194_vm0, %v2310_v3  ;;  %1155 = vmatprep.subr.mxu0 %v185_v26 }
  0x5e   : > { %1079 = vmatpush1.msra.mxu1 %v182_v27  ;;  %964 = vmatprep.mubr.f32.mxu1 %v2176_v0 }
  0x5f   : > { %2006 = vmatmul.mubr.msk.f32.gmra.mxu0 %vm194_vm0, %v2322_v9  ;;  %1232 = vmatprep.subr.mxu1 %v187_v28 }
  0x60   : > { %1035 = vmatprep.mubr.f32.mxu0 %v2176_v0 }
  0x61   : > { %2008 = vmatmul.mubr.msk.f32.gmra.mxu1 %vm194_vm0, %v2322_v9 }
  0x62   : > { %1112 = vmatprep.mubr.f32.mxu1 %v2176_v0 }
  0x63   : > { %2009 = vmatmul.mubr.msk.f32.vlgmr.msra.gmra.mxu0 %vm194_vm0, %v2310_v3 }
  0x64   : > { %1156 = vmatpush1.msra.mxu0 %v184_v29  ;;  %1041 = vmatprep.mubr.f32.mxu0 %v2176_v0 }
  0x65   : > { %2011 = vmatmul.mubr.msk.f32.vlgmr.msra.gmra.mxu1 %vm194_vm0, %v2310_v3  ;;  %1309 = vmatprep.subr.mxu0 %v189_v30 }
  0x66   : > { %1233 = vmatpush1.msra.mxu1 %v186_v31  ;;  %1118 = vmatprep.mubr.f32.mxu1 %v2176_v0 }
  0x67   : > { %2010 = vmatmul.mubr.msk.f32.gmra.mxu0 %vm194_vm0, %v2322_v9  ;;  %1386 = vmatprep.subr.mxu1 %v191_v32 }
  0x68   : > { %1189 = vmatprep.mubr.f32.mxu0 %v2176_v0 }
  0x69   : > { %2012 = vmatmul.mubr.msk.f32.gmra.mxu1 %vm194_vm0, %v2322_v9 }
  0x6a   : > { %1266 = vmatprep.mubr.f32.mxu1 %v2176_v0 }
  0x6b   : > { %2013 = vmatmul.mubr.msk.f32.vlgmr.msra.gmra.mxu0 %vm194_vm0, %v2310_v3 }
  0x6c   : > { %1310 = vmatpush1.msra.mxu0 %v188_v33  ;;  %1195 = vmatprep.mubr.f32.mxu0 %v2176_v0 }
  0x6d   : > { %2015 = vmatmul.mubr.msk.f32.vlgmr.msra.gmra.mxu1 %vm194_vm0, %v2310_v3 }
  0x6e   : > { %1387 = vmatpush1.msra.mxu1 %v190_v34  ;;  %1272 = vmatprep.mubr.f32.mxu1 %v2176_v0 }
  0x6f   : > { %2014 = vmatmul.mubr.msk.f32.gmra.mxu0 %vm194_vm0, %v2322_v9 }
  0x70   : > { %1343 = vmatprep.mubr.f32.mxu0 %v2176_v0 }
  0x71   : > { %2016 = vmatmul.mubr.msk.f32.gmra.mxu1 %vm194_vm0, %v2322_v9 }
  0x72   : > { %1420 = vmatprep.mubr.f32.mxu1 %v2176_v0 }
  0x73   : > { %2017 = vmatmul.mubr.msk.f32.vlgmr.msra.gmra.mxu0 %vm194_vm0, %v2310_v3 }
  0x74   : > { %1349 = vmatprep.mubr.f32.mxu0 %v2176_v0 }
  0x75   : > { %2019 = vmatmul.mubr.msk.f32.vlgmr.msra.gmra.mxu1 %vm194_vm0, %v2310_v3 }
  0x76   : > { %1426 = vmatprep.mubr.f32.mxu1 %v2176_v0 }
  0x77   : > { %2018 = vmatmul.mubr.msk.f32.gmra.mxu0 %vm194_vm0, %v2322_v9 }
  0x79   : > { %2020 = vmatmul.mubr.msk.f32.gmra.mxu1 %vm194_vm0, %v2322_v9 }
  0xfb   : > { %v2441_v35 = vpop.f32.mrf.mxu0 }
  0xfd   : > { %v2443_v36 = vpop.f32.mrf.mxu0  ;;  %v2445_v37 = vpop.f32.mrf.mxu1 }
  0xfe   : > { %v1433_v38 = vadd.f32 %v2443_v36, %v2441_v35 }
  0xff   : > { %v2449_v39 = vpop.f32.mrf.mxu0  ;;  %v2451_v40 = vpop.f32.mrf.mxu1 }
 0x100   : > { %v1434_v41 = vadd.f32 %v1433_v38, %v2445_v37 }
 0x101   : > { %v2454_v42 = vpop.f32.mrf.mxu0  ;;  %v2456_v43 = vpop.f32.mrf.mxu1 }
 0x102   : > { %v1435_v44 = vadd.f32 %v1434_v41, %v2451_v40  ;;  %v1466_v45 = vadd.f32 %v2454_v42, %v2449_v39 }
 0x103   : > { %v2461_v46 = vpop.f32.mrf.mxu0  ;;  %v2463_v47 = vpop.f32.mrf.mxu1 }
 0x104   : > { %v1467_v48 = vadd.f32 %v1466_v45, %v2456_v43  ;;  %v1436_v49 = vadd.f32 %v1435_v44, %v2461_v46 }
 0x105   : > { %v2467_v50 = vpop.f32.mrf.mxu0  ;;  %v2469_v51 = vpop.f32.mrf.mxu1 }
 0x106   : > { %v1468_v52 = vadd.f32 %v1467_v48, %v2463_v47  ;;  %v1437_v53 = vadd.f32 %v1436_v49, %v2467_v50 }
 0x107   : > { %v2473_v54 = vpop.f32.mrf.mxu0  ;;  %v2475_v55 = vpop.f32.mrf.mxu1 }
 0x108   : > { %v1438_v56 = vadd.f32 %v1437_v53, %v2469_v51  ;;  %v1469_v57 = vadd.f32 %v1468_v52, %v2473_v54 }
 0x109   : > { %v2479_v58 = vpop.f32.mrf.mxu0  ;;  %v2481_v59 = vpop.f32.mrf.mxu1 }
 0x10a   : > { %v1439_v60 = vadd.f32 %v1438_v56, %v2475_v55  ;;  %v1470_v61 = vadd.f32 %v1469_v57, %v2479_v58 }
 0x10b   : > { %v2485_v62 = vpop.f32.mrf.mxu0  ;;  %v2487_v63 = vpop.f32.mrf.mxu1 }
 0x10c   : > { %v1471_v0 = vadd.f32 %v1470_v61, %v2481_v59  ;;  %v1440_v1 = vadd.f32 %v1439_v60, %v2485_v62 }
 0x10d   : > { %v2491_v2 = vpop.f32.mrf.mxu0  ;;  %v2493_v3 = vpop.f32.mrf.mxu1 }
 0x10e   : > { %v1472_v4 = vadd.f32 %v1471_v0, %v2487_v63  ;;  %v1441_v5 = vadd.f32 %v1440_v1, %v2491_v2 }
 0x10f   : > { %v2497_v6 = vpop.f32.mrf.mxu0  ;;  %v2499_v7 = vpop.f32.mrf.mxu1 }
 0x110   : > { %v1442_v8 = vadd.f32 %v1441_v5, %v2493_v3  ;;  %v1473_v9 = vadd.f32 %v1472_v4, %v2497_v6 }
 0x111   : > { %v2503_v10 = vpop.f32.mrf.mxu0  ;;  %v2505_v11 = vpop.f32.mrf.mxu1 }
 0x112   : > { %v1443_v12 = vadd.f32 %v1442_v8, %v2499_v7  ;;  %v1474_v13 = vadd.f32 %v1473_v9, %v2503_v10 }
 0x113   : > { %v2509_v14 = vpop.f32.mrf.mxu0  ;;  %v2511_v15 = vpop.f32.mrf.mxu1 }
 0x114   : > { %v1475_v16 = vadd.f32 %v1474_v13, %v2505_v11  ;;  %v1444_v17 = vadd.f32 %v1443_v12, %v2509_v14 }
 0x115   : > { %v2515_v18 = vpop.f32.mrf.mxu0  ;;  %v2517_v19 = vpop.f32.mrf.mxu1 }
 0x116   : > { %v1476_v20 = vadd.f32 %v1475_v16, %v2511_v15  ;;  %v1445_v21 = vadd.f32 %v1444_v17, %v2515_v18 }
 0x117   : > { %v2521_v22 = vpop.f32.mrf.mxu0  ;;  %v2523_v23 = vpop.f32.mrf.mxu1 }
 0x118   : > { %v1446_v24 = vadd.f32 %v1445_v21, %v2517_v19  ;;  %v1477_v25 = vadd.f32 %v1476_v20, %v2521_v22 }
 0x119   : > { %v2527_v26 = vpop.f32.mrf.mxu0  ;;  %v2529_v27 = vpop.f32.mrf.mxu1 }
 0x11a   : > { %v1447_v28 = vadd.f32 %v1446_v24, %v2523_v23  ;;  %v1478_v29 = vadd.f32 %v1477_v25, %v2527_v26 }
 0x11b   : > { %v2533_v30 = vpop.f32.mrf.mxu0  ;;  %v2535_v31 = vpop.f32.mrf.mxu1 }
 0x11c   : > { %v1479_v32 = vadd.f32 %v1478_v29, %v2529_v27  ;;  %v1448_v33 = vadd.f32 %v1447_v28, %v2533_v30 }
 0x11d   : > { %v2539_v34 = vpop.f32.mrf.mxu0  ;;  %v2541_v38 = vpop.f32.mrf.mxu1 }
 0x11e   : > { %v1480_v41 = vadd.f32 %v1479_v32, %v2535_v31  ;;  %v1449_v44 = vadd.f32 %v1448_v33, %v2539_v34 }
 0x11f   : > { %v2545_v45 = vpop.f32.mrf.mxu0  ;;  %v2547_v48 = vpop.f32.mrf.mxu1 }
 0x120   : > { %v1450_v49 = vadd.f32 %v1449_v44, %v2541_v38  ;;  %v1481_v52 = vadd.f32 %v1480_v41, %v2545_v45 }
 0x121   : > { %v2551_v53 = vpop.f32.mrf.mxu0  ;;  %v2553_v56 = vpop.f32.mrf.mxu1 }
 0x122   : > { %v1451_v57 = vadd.f32 %v1450_v49, %v2547_v48  ;;  %v1482_v60 = vadd.f32 %v1481_v52, %v2551_v53 }
 0x123   : > { %v2557_v61 = vpop.f32.mrf.mxu0  ;;  %v2559_v0 = vpop.f32.mrf.mxu1 }
 0x124   : > { %v1483_v1 = vadd.f32 %v1482_v60, %v2553_v56  ;;  %v1452_v4 = vadd.f32 %v1451_v57, %v2557_v61 }
 0x125   : > { %v2563_v5 = vpop.f32.mrf.mxu0  ;;  %v2565_v8 = vpop.f32.mrf.mxu1 }
 0x126   : > { %v1484_v9 = vadd.f32 %v1483_v1, %v2559_v0  ;;  %v1453_v12 = vadd.f32 %v1452_v4, %v2563_v5 }
 0x127   : > { %v2569_v13 = vpop.f32.mrf.mxu0  ;;  %v2571_v16 = vpop.f32.mrf.mxu1 }
 0x128   : > { %v1454_v17 = vadd.f32 %v1453_v12, %v2565_v8  ;;  %v1485_v20 = vadd.f32 %v1484_v9, %v2569_v13 }
 0x129   : > { %v2575_v21 = vpop.f32.mrf.mxu0  ;;  %v2577_v24 = vpop.f32.mrf.mxu1 }
 0x12a   : > { %3422 = vst [vmem:[#allocation8_spill] sm:$0xff] %v2577_v24  ;;  %v1455_v25 = vadd.f32 %v1454_v17, %v2571_v16  ;;  %v1486_v28 = vadd.f32 %v1485_v20, %v2575_v21 }
 0x12b   : > { %v2581_v29 = vpop.f32.mrf.mxu0  ;;  %v2583_v32 = vpop.f32.mrf.mxu1 }
 0x12c   : > { %3423 = vst [vmem:[#allocation9_spill] sm:$0xff] %v2583_v32  ;;  %v1487_v33 = vadd.f32 %v1486_v28, %v2577_v24  ;;  %v1456_v41 = vadd.f32 %v1455_v25, %v2581_v29 }
 0x12d   : > { %v2587_v44 = vpop.f32.mrf.mxu0  ;;  %v2589_v49 = vpop.f32.mrf.mxu1 }
 0x12e   : > { %3424 = vst [vmem:[#allocation10_spill] sm:$0xff] %v2589_v49  ;;  %v1488_v52 = vadd.f32 %v1487_v33, %v2583_v32  ;;  %v1457_v57 = vadd.f32 %v1456_v41, %v2587_v44 }
 0x12f   : > { %v2593_v60 = vpop.f32.mrf.mxu0  ;;  %v2595_v1 = vpop.f32.mrf.mxu1 }
 0x130   : > { %3425 = vst [vmem:[#allocation11_spill] sm:$0xff] %v2593_v60  ;;  %3426 = vst [vmem:[#allocation12_spill] sm:$0xff] %v2595_v1  ;;  %v1458_v4 = vadd.f32 %v1457_v57, %v2589_v49  ;;  %v1489_v9 = vadd.f32 %v1488_v52, %v2593_v60 }
 0x131   : > { %v2599_v12 = vpop.f32.mrf.mxu0  ;;  %v2601_v17 = vpop.f32.mrf.mxu1 }
 0x132   : > { %3427 = vst [vmem:[#allocation13_spill] sm:$0xff] %v2599_v12  ;;  %3428 = vst [vmem:[#allocation14_spill] sm:$0xff] %v2601_v17  ;;  %v1459_v20 = vadd.f32 %v1458_v4, %v2595_v1  ;;  %v1490_v25 = vadd.f32 %v1489_v9, %v2599_v12 }
 0x133   : > { %v2605_v28 = vpop.f32.mrf.mxu0  ;;  %v2607_v33 = vpop.f32.mrf.mxu1 }
 0x134   : > { %3429 = vst [vmem:[#allocation15_spill] sm:$0xff] %v2607_v33  ;;  %v1491_v41 = vadd.f32 %v1490_v25, %v2601_v17  ;;  %v1460_v32 = vadd.f32 %v1459_v20, %v2605_v28 }
 0x135   : > { %v2611_v24 = vpop.f32.mrf.mxu0  ;;  %v2613_v57 = vpop.f32.mrf.mxu1 }
 0x136   : > { %3430 = vst [vmem:[#allocation16_spill] sm:$0xff] %v2611_v24  ;;  %v1492_v52 = vadd.f32 %v1491_v41, %v2607_v33  ;;  %v1461_v60 = vadd.f32 %v1460_v32, %v2611_v24 }
 0x137   : > { %v2617_v49 = vpop.f32.mrf.mxu0  ;;  %v2619_v4 = vpop.f32.mrf.mxu1 }
 0x138   : > { %v1462_v9 = vadd.f32 %v1461_v60, %v2613_v57  ;;  %v1493_v12 = vadd.f32 %v1492_v52, %v2617_v49 }
 0x139   : > { %v2623_v1 = vpop.f32.mrf.mxu0  ;;  %v2625_v25 = vpop.f32.mrf.mxu1 }
 0x13a   : > { %v1494_v20 = vadd.f32 %v1493_v12, %v2623_v1  ;;  %v1463_v17 = vadd.f32 %v1462_v9, %v2619_v4 }
 0x13b   : > { %v2630_v32 = vpop.f32.mrf.mxu1 }
 0x13c   : > { %v1495_v41 = vadd.f32 %v1494_v20, %v2625_v25  ;;  %1464 = vadd.xlane.f32.xlu0 %v1463_v17 }
 0x13e   : > { %v1496_v33 = vadd.f32 %v1495_v41, %v2630_v32 }
 0x140   : > { %1497 = vadd.xlane.f32.xlu0 %v1496_v33 }
 0x1c5   : > { %v1465_v24 = vpop.xlane.xlu0 %1464 }
 0x1c6   : > { %v2633_v60 = vmul.f32 0.00024414063, %v1465_v24 }
 0x1c8   : > { %v2637_v52 = vsub.f32 %v2441_v35, %v2633_v60  ;;  %v2641_v12 = vsub.f32 %v2443_v36, %v2633_v60  ;;  %v2645_v17 = vsub.f32 %v2445_v37, %v2633_v60  ;;  %v2655_v35 = vsub.f32 %v2451_v40, %v2633_v60 }
 0x1c9   : > { %v1498_v9 = vpop.xlane.xlu0 %1497  ;;  %v2659_v36 = vsub.f32 %v2461_v46, %v2633_v60  ;;  %v2673_v40 = vsub.f32 %v2467_v50, %v2633_v60 }
 0x1ca   : > { %3431 = vst [vmem:[#allocation17_spill] sm:$0xff] %v2637_v52  ;;  %3432 = vst [vmem:[#allocation18_spill] sm:$0xff] %v2641_v12  ;;  %v1565_v20 = vmul.f32 %v2637_v52, %v2637_v52  ;;  %v1566_v24 = vmul.f32 %v2641_v12, %v2641_v12  ;;  %v2651_v33 = vmul.f32 0.00024414063, %v1498_v9  ;;  %v1567_v37 = vmul.f32 %v2645_v17, %v2645_v17 }
 0x1cb   : > { %3433 = vst [vmem:[#allocation19_spill] sm:$0xff] %v2645_v17  ;;  %v1568_v46 = vmul.f32 %v2655_v35, %v2655_v35  ;;  %v2679_v17 = vsub.f32 %v2469_v51, %v2633_v60  ;;  %v1570_v51 = vmul.f32 %v2673_v40, %v2673_v40 }
 0x1cc   : > { %v1629_v41 = vadd.f32 %v1566_v24, %v1565_v20  ;;  %v2665_v52 = vsub.f32 %v2449_v39, %v2651_v33  ;;  %v2669_v9 = vsub.f32 %v2454_v42, %v2651_v33  ;;  %v1569_v39 = vmul.f32 %v2659_v36, %v2659_v36 }
 0x1cd   : > { %3436 = vst [vmem:[#allocation22_spill] sm:$0xff] %v2679_v17  ;;  %v2685_v42 = vsub.f32 %v2456_v43, %v2651_v33  ;;  %v2703_v43 = vsub.f32 %v2485_v62, %v2633_v60 }
 0x1ce   : > { %3434 = vst [vmem:[#allocation20_spill] sm:$0xff] %v2665_v52  ;;  %3435 = vst [vmem:[#allocation21_spill] sm:$0xff] %v2669_v9  ;;  %v1630_v12 = vadd.f32 %v1629_v41, %v1567_v37  ;;  %v1597_v50 = vmul.f32 %v2665_v52, %v2665_v52  ;;  %v1598_v24 = vmul.f32 %v2669_v9, %v2669_v9 }
 0x1cf   : > { %v2693_v37 = vsub.f32 %v2475_v55, %v2633_v60  ;;  %v2709_v55 = vsub.f32 %v2473_v54, %v2651_v33  ;;  %v1599_v52 = vmul.f32 %v2685_v42, %v2685_v42 }
 0x1d0   : > { %v1631_v20 = vadd.f32 %v1630_v12, %v1568_v46  ;;  %v2699_v12 = vsub.f32 %v2463_v47, %v2651_v33  ;;  %v1571_v46 = vmul.f32 %v2679_v17, %v2679_v17  ;;  %v2715_v47 = vsub.f32 %v2491_v2, %v2633_v60 }
 0x1d1   : > { %v1572_v62 = vmul.f32 %v2693_v37, %v2693_v37  ;;  %v2721_v17 = vsub.f32 %v2479_v58, %v2651_v33  ;;  %v1573_v2 = vmul.f32 %v2703_v43, %v2703_v43  ;;  %v1601_v58 = vmul.f32 %v2709_v55, %v2709_v55 }
 0x1d2   : > { %v1632_v41 = vadd.f32 %v1631_v20, %v1569_v39  ;;  %v1662_v39 = vadd.f32 %v1598_v24, %v1597_v50  ;;  %v1600_v54 = vmul.f32 %v2699_v12, %v2699_v12  ;;  %v2733_v24 = vsub.f32 %v2481_v59, %v2651_v33 }
 0x1d3   : > { %v1602_v59 = vmul.f32 %v2721_v17, %v2721_v17 }
 0x1d4   : > { %v1633_v9 = vadd.f32 %v1632_v41, %v1570_v51  ;;  %v1663_v51 = vadd.f32 %v1662_v39, %v1599_v52  ;;  %v2727_v41 = vsub.f32 %v2493_v3, %v2633_v60  ;;  %v1574_v3 = vmul.f32 %v2715_v47, %v2715_v47 }
 0x1d5   : > { %v2745_v39 = vsub.f32 %v2487_v63, %v2651_v33  ;;  %v1603_v63 = vmul.f32 %v2733_v24, %v2733_v24 }
 0x1d6   : > { %v1634_v20 = vadd.f32 %v1633_v9, %v1571_v46  ;;  %v1664_v9 = vadd.f32 %v1663_v51, %v1600_v54  ;;  %v2739_v46 = vsub.f32 %v2499_v7, %v2633_v60  ;;  %v1575_v7 = vmul.f32 %v2727_v41, %v2727_v41 }
 0x1d7   : > { %v2757_v51 = vsub.f32 %v2497_v6, %v2651_v33  ;;  %v1604_v6 = vmul.f32 %v2745_v39, %v2745_v39 }
 0x1d8   : > { %v1635_v50 = vadd.f32 %v1634_v20, %v1572_v62  ;;  %v1665_v62 = vadd.f32 %v1664_v9, %v1601_v58  ;;  %v2751_v20 = vsub.f32 %v2509_v14, %v2633_v60  ;;  %v1576_v14 = vmul.f32 %v2739_v46, %v2739_v46 }
 0x1d9   : > { %v2769_v9 = vsub.f32 %v2503_v10, %v2651_v33  ;;  %v1605_v10 = vmul.f32 %v2757_v51, %v2757_v51 }
 0x1da   : > { %v1636_v52 = vadd.f32 %v1635_v50, %v1573_v2  ;;  %v1666_v2 = vadd.f32 %v1665_v62, %v1602_v59  ;;  %v2763_v50 = vsub.f32 %v2515_v18, %v2633_v60  ;;  %v1577_v18 = vmul.f32 %v2751_v20, %v2751_v20 }
 0x1db   : > { %v2781_v62 = vsub.f32 %v2505_v11, %v2651_v33  ;;  %v1606_v11 = vmul.f32 %v2769_v9, %v2769_v9 }
 0x1dc   : > { %v1637_v54 = vadd.f32 %v1636_v52, %v1574_v3  ;;  %v1667_v3 = vadd.f32 %v1666_v2, %v1603_v63  ;;  %v2775_v52 = vsub.f32 %v2517_v19, %v2633_v60  ;;  %v1578_v19 = vmul.f32 %v2763_v50, %v2763_v50 }
 0x1dd   : > { %v2793_v2 = vsub.f32 %v2511_v15, %v2651_v33  ;;  %v1607_v15 = vmul.f32 %v2781_v62, %v2781_v62 }
 0x1de   : > { %v1638_v58 = vadd.f32 %v1637_v54, %v1575_v7  ;;  %v1668_v7 = vadd.f32 %v1667_v3, %v1604_v6  ;;  %v2787_v54 = vsub.f32 %v2523_v23, %v2633_v60  ;;  %v1579_v23 = vmul.f32 %v2775_v52, %v2775_v52 }
 0x1df   : > { %v2805_v3 = vsub.f32 %v2521_v22, %v2651_v33  ;;  %v1608_v22 = vmul.f32 %v2793_v2, %v2793_v2 }
 0x1e0   : > { %v1639_v59 = vadd.f32 %v1638_v58, %v1576_v14  ;;  %v1669_v14 = vadd.f32 %v1668_v7, %v1605_v10  ;;  %v2799_v58 = vsub.f32 %v2533_v30, %v2633_v60  ;;  %v1580_v30 = vmul.f32 %v2787_v54, %v2787_v54 }
 0x1e1   : > { %v2817_v7 = vsub.f32 %v2527_v26, %v2651_v33  ;;  %v1609_v26 = vmul.f32 %v2805_v3, %v2805_v3 }
 0x1e2   : > { %v1640_v63 = vadd.f32 %v1639_v59, %v1577_v18  ;;  %v1670_v18 = vadd.f32 %v1669_v14, %v1606_v11  ;;  %v2811_v59 = vsub.f32 %v2539_v34, %v2633_v60  ;;  %v1581_v34 = vmul.f32 %v2799_v58, %v2799_v58 }
 0x1e3   : > { %v2829_v14 = vsub.f32 %v2529_v27, %v2651_v33  ;;  %v1610_v27 = vmul.f32 %v2817_v7, %v2817_v7 }
 0x1e4   : > { %v1641_v6 = vadd.f32 %v1640_v63, %v1578_v19  ;;  %v1671_v19 = vadd.f32 %v1670_v18, %v1607_v15  ;;  %v2823_v63 = vsub.f32 %v2541_v38, %v2633_v60  ;;  %v1582_v38 = vmul.f32 %v2811_v59, %v2811_v59 }
 0x1e5   : > { %v2841_v18 = vsub.f32 %v2535_v31, %v2651_v33  ;;  %v1611_v31 = vmul.f32 %v2829_v14, %v2829_v14 }
 0x1e6   : > { %v1642_v10 = vadd.f32 %v1641_v6, %v1579_v23  ;;  %v1672_v23 = vadd.f32 %v1671_v19, %v1608_v22  ;;  %v2835_v6 = vsub.f32 %v2547_v48, %v2633_v60  ;;  %v1583_v48 = vmul.f32 %v2823_v63, %v2823_v63 }
 0x1e7   : > { %3437 = vst [vmem:[#allocation23_spill] sm:$0xff] %v2841_v18  ;;  %v2853_v19 = vsub.f32 %v2545_v45, %v2651_v33  ;;  %v1612_v45 = vmul.f32 %v2841_v18, %v2841_v18 }
 0x1e8   : > { %v1643_v11 = vadd.f32 %v1642_v10, %v1580_v30  ;;  %v1673_v30 = vadd.f32 %v1672_v23, %v1609_v26  ;;  %v2847_v10 = vsub.f32 %v2557_v61, %v2633_v60  ;;  %v1584_v61 = vmul.f32 %v2835_v6, %v2835_v6 }
 0x1e9   : > { %3438 = vst [vmem:[#allocation24_spill] sm:$0xff] %v2853_v19  ;;  %v2865_v23 = vsub.f32 %v2551_v53, %v2651_v33  ;;  %v1613_v53 = vmul.f32 %v2853_v19, %v2853_v19 }
 0x1ea   : > { %v1644_v15 = vadd.f32 %v1643_v11, %v1581_v34  ;;  %v1674_v34 = vadd.f32 %v1673_v30, %v1610_v27  ;;  %v2859_v11 = vsub.f32 %v2563_v5, %v2633_v60  ;;  %v1585_v5 = vmul.f32 %v2847_v10, %v2847_v10 }
 0x1eb   : > { %3439 = vst [vmem:[#allocation25_spill] sm:$0xff] %v2865_v23  ;;  %v2877_v30 = vsub.f32 %v2553_v56, %v2651_v33  ;;  %v1614_v56 = vmul.f32 %v2865_v23, %v2865_v23 }
 0x1ec   : > { %v1645_v22 = vadd.f32 %v1644_v15, %v1582_v38  ;;  %v1675_v38 = vadd.f32 %v1674_v34, %v1611_v31  ;;  %v2871_v15 = vsub.f32 %v2565_v8, %v2633_v60  ;;  %v1586_v8 = vmul.f32 %v2859_v11, %v2859_v11 }
 0x1ed   : > { %3440 = vst [vmem:[#allocation26_spill] sm:$0xff] %v2877_v30  ;;  %v2889_v34 = vsub.f32 %v2559_v0, %v2651_v33  ;;  %v1615_v0 = vmul.f32 %v2877_v30, %v2877_v30 }
 0x1ee   : > { %v1646_v26 = vadd.f32 %v1645_v22, %v1583_v48  ;;  %v1676_v48 = vadd.f32 %v1675_v38, %v1612_v45  ;;  %v2883_v22 = vsub.f32 %v2571_v16, %v2633_v60  ;;  %v1587_v16 = vmul.f32 %v2871_v15, %v2871_v15 }
 0x1ef   : > { %3441 = vst [vmem:[#allocation27_spill] sm:$0xff] %v2889_v34  ;;  %v2901_v38 = vsub.f32 %v2569_v13, %v2651_v33  ;;  %v1616_v13 = vmul.f32 %v2889_v34, %v2889_v34 }
 0x1f0   : > { %v1647_v27 = vadd.f32 %v1646_v26, %v1584_v61  ;;  %v1677_v61 = vadd.f32 %v1676_v48, %v1613_v53  ;;  %v2895_v26 = vsub.f32 %v2581_v29, %v2633_v60  ;;  %v1588_v29 = vmul.f32 %v2883_v22, %v2883_v22 }
 0x1f1   : > { %3442 = vst [vmem:[#allocation28_spill] sm:$0xff] %v2901_v38  ;;  %v2913_v48 = vsub.f32 %v2575_v21, %v2651_v33  ;;  %v1617_v21 = vmul.f32 %v2901_v38, %v2901_v38 }
 0x1f2   : > { %v1648_v31 = vadd.f32 %v1647_v27, %v1585_v5  ;;  %v1678_v5 = vadd.f32 %v1677_v61, %v1614_v56  ;;  %v2907_v27 = vsub.f32 %v2587_v44, %v2633_v60  ;;  %v1589_v44 = vmul.f32 %v2895_v26, %v2895_v26  ;;  %v3445_v61 = vld [vmem:[#allocation8_spill] sm:$0xff] }
 0x1f3   : > { %3443 = vst [vmem:[#allocation29_spill] sm:$0xff] %v2913_v48  ;;  %v2925_v23 = vsub.f32 %v3445_v61, %v2651_v33  ;;  %v2943_v61 = vsub.f32 %v2605_v28, %v2633_v60 }
 0x1f4   : > { %v1649_v45 = vadd.f32 %v1648_v31, %v1586_v8  ;;  %v1679_v8 = vadd.f32 %v1678_v5, %v1615_v0  ;;  %v3444_v31 = vld [vmem:[#allocation10_spill] sm:$0xff]  ;;  %v1590_v0 = vmul.f32 %v2907_v27, %v2907_v27 }
 0x1f5   : > { %v2919_v30 = vsub.f32 %v3444_v31, %v2633_v60  ;;  %3446 = vst [vmem:[#allocation10_spill] sm:$0xff] %v2925_v23  ;;  %v3448_v31 = vld [vmem:[#allocation9_spill] sm:$0xff] }
 0x1f6   : > { %v1650_v53 = vadd.f32 %v1649_v45, %v1587_v16  ;;  %v1680_v16 = vadd.f32 %v1679_v8, %v1616_v13  ;;  %v3447_v45 = vld [vmem:[#allocation12_spill] sm:$0xff]  ;;  %v2937_v19 = vsub.f32 %v3448_v31, %v2651_v33 }
 0x1f7   : > { %v2931_v34 = vsub.f32 %v3447_v45, %v2633_v60  ;;  %v1591_v13 = vmul.f32 %v2919_v30, %v2919_v30  ;;  %v3450_v45 = vld [vmem:[#allocation11_spill] sm:$0xff]  ;;  %v3451_v31 = vld [vmem:[#allocation16_spill] sm:$0xff] }
 0x1f8   : > { %v1651_v56 = vadd.f32 %v1650_v53, %v1588_v29  ;;  %3449 = vst [vmem:[#allocation8_spill] sm:$0xff] %v2937_v19  ;;  %v1618_v29 = vmul.f32 %v2913_v48, %v2913_v48  ;;  %v1681_v53 = vadd.f32 %v1680_v16, %v1617_v21  ;;  %v2949_v38 = vsub.f32 %v3450_v45, %v2651_v33  ;;  %v3452_v16 = vld [vmem:[#allocation13_spill] sm:$0xff] }
 0x1f9   : > { %v2955_v48 = vsub.f32 %v3451_v31, %v2633_v60  ;;  %v1592_v28 = vmul.f32 %v2931_v34, %v2931_v34  ;;  %v2961_v18 = vsub.f32 %v3452_v16, %v2651_v33  ;;  %v2967_v45 = vsub.f32 %v2613_v57, %v2633_v60  ;;  %v3453_v31 = vld [vmem:[#allocation14_spill] sm:$0xff] }
 0x1fa   : > { %v1652_v5 = vadd.f32 %v1651_v56, %v1589_v44  ;;  %v1619_v44 = vmul.f32 %v2925_v23, %v2925_v23  ;;  %v1682_v56 = vadd.f32 %v1681_v53, %v1618_v29  ;;  %v1593_v29 = vmul.f32 %v2943_v61, %v2943_v61 }
 0x1fb   : > { %v2973_v23 = vsub.f32 %v3453_v31, %v2651_v33  ;;  %v2979_v16 = vsub.f32 %v2619_v4, %v2633_v60  ;;  %v1594_v57 = vmul.f32 %v2955_v48, %v2955_v48  ;;  %v1595_v31 = vmul.f32 %v2967_v45, %v2967_v45 }
 0x1fc   : > { %v1653_v8 = vadd.f32 %v1652_v5, %v1590_v0  ;;  %v1620_v0 = vmul.f32 %v2937_v19, %v2937_v19  ;;  %v1683_v5 = vadd.f32 %v1682_v56, %v1619_v44  ;;  %v3454_v56 = vld [vmem:[#allocation15_spill] sm:$0xff]  ;;  %v2993_v4 = vsub.f32 %v2617_v49, %v2651_v33 }
 0x1fd   : > { %v2985_v19 = vsub.f32 %v3454_v56, %v2651_v33  ;;  %v1623_v60 = vmul.f32 %v2973_v23, %v2973_v23  ;;  %v3001_v56 = vsub.f32 %v2623_v1, %v2651_v33  ;;  %v3007_v49 = vsub.f32 %v2625_v25, %v2651_v33 }
 0x1fe   : > { %v1654_v21 = vadd.f32 %v1653_v8, %v1591_v13  ;;  %v1621_v13 = vmul.f32 %v2949_v38, %v2949_v38  ;;  %v1684_v8 = vadd.f32 %v1683_v5, %v1620_v0  ;;  %3455 = vst [vmem:[#allocation12_spill] sm:$0xff] %v2993_v4 }
 0x1ff   : > { %3456 = vst [vmem:[#allocation9_spill] sm:$0xff] %v3001_v56  ;;  %3457 = vst [vmem:[#allocation11_spill] sm:$0xff] %v3007_v49  ;;  %v1626_v1 = vmul.f32 %v3001_v56, %v3001_v56 }
 0x200   : > { %v1655_v53 = vadd.f32 %v1654_v21, %v1592_v28  ;;  %v1622_v28 = vmul.f32 %v2961_v18, %v2961_v18  ;;  %v1685_v21 = vadd.f32 %v1684_v8, %v1621_v13  ;;  %v1624_v13 = vmul.f32 %v2985_v19, %v2985_v19 }
 0x202   : > { %v1656_v44 = vadd.f32 %v1655_v53, %v1593_v29  ;;  %v1686_v5 = vadd.f32 %v1685_v21, %v1622_v28  ;;  %v1596_v29 = vmul.f32 %v2979_v16, %v2979_v16  ;;  %v3013_v21 = vsub.f32 %v2630_v32, %v2651_v33 }
 0x204   : > { %v1657_v0 = vadd.f32 %v1656_v44, %v1594_v57  ;;  %v1687_v8 = vadd.f32 %v1686_v5, %v1623_v60  ;;  %v1625_v44 = vmul.f32 %v2993_v4, %v2993_v4  ;;  %v1628_v25 = vmul.f32 %v3013_v21, %v3013_v21  ;;  %v3459_v4 = vld [vmem:[#allocation18_spill] sm:$0xff] }
 0x206   : > { %v1658_v53 = vadd.f32 %v1657_v0, %v1595_v31  ;;  %v1688_v28 = vadd.f32 %v1687_v8, %v1624_v13  ;;  %v1627_v0 = vmul.f32 %v3007_v49, %v3007_v49 }
 0x208   : > { %v1659_v57 = vadd.f32 %v1658_v53, %v1596_v29  ;;  %v1689_v31 = vadd.f32 %v1688_v28, %v1625_v44  ;;  %v3458_v44 = vld [vmem:[#allocation17_spill] sm:$0xff] }
 0x20a   : > { %1660 = vadd.xlane.f32.xlu1 %v1659_v57  ;;  %v1690_v60 = vadd.f32 %v1689_v31, %v1626_v1  ;;  %v3460_v31 = vld [vmem:[#allocation19_spill] sm:$0xff] }
 0x20c   : > { %v1691_v5 = vadd.f32 %v1690_v60, %v1627_v0 }
 0x20e   : > { %v1692_v29 = vadd.f32 %v1691_v5, %v1628_v25  ;;  %v3461_v5 = vld [vmem:[#allocation22_spill] sm:$0xff] }
 0x210   : > { %1693 = vadd.xlane.f32.xlu1 %v1692_v29 }
 0x293   : > { %v1661_v53 = vpop.xlane.xlu1 %1660 }
 0x294   : > { %v1695_v13 = vmul.f32 0.00024414063, %v1661_v53 }
 0x296   : > { %v1697_v8 = vadd.f32 1e-05, %v1695_v13 }
 0x298   : > { %2077 = vrsqrt.f32 %v1697_v8 }
 0x299   : > { %v1694_v32 = vpop.xlane.xlu1 %1693 }
 0x29a   : > { %v1696_v33 = vmul.f32 0.00024414063, %v1694_v32 }
 0x29c   : > { %v1698_v57 = vadd.f32 1e-05, %v1696_v33 }
 0x29e   : > { %2079 = vrsqrt.f32 %v1698_v57 }
 0x2a5   : > { %v2078_v56 = vpop.eup %2077 }
 0x2a6   : > { %v1701_v28 = vmul.f32 %v2078_v56, %v3458_v44  ;;  %v1702_v1 = vmul.f32 %v2078_v56, %v3459_v4  ;;  %v1703_v49 = vmul.f32 %v2078_v56, %v3460_v31  ;;  %v1704_v0 = vmul.f32 %v2078_v56, %v2655_v35  ;;  %v3462_v44 = vld [vmem:[#allocation20_spill] sm:$0xff]  ;;  %v3463_v31 = vld [vmem:[#allocation21_spill] sm:$0xff] }
 0x2a7   : > { %v3026_v60 = vmul.f32 %v2078_v56, %v2659_v36  ;;  %v3029_v25 = vmul.f32 %v2078_v56, %v2673_v40  ;;  %v3032_v29 = vmul.f32 %v2078_v56, %v3461_v5  ;;  %v3035_v53 = vmul.f32 %v2078_v56, %v2693_v37 }
 0x2a8   : > { %v3038_v13 = vmul.f32 %v2078_v56, %v2703_v43  ;;  %v3041_v4 = vmul.f32 %v2078_v56, %v2715_v47  ;;  %v3044_v35 = vmul.f32 %v2078_v56, %v2727_v41  ;;  %v3047_v36 = vmul.f32 %v2078_v56, %v2739_v46 }
 0x2a9   : > { %v3050_v40 = vmul.f32 %v2078_v56, %v2751_v20  ;;  %v3053_v8 = vmul.f32 %v2078_v56, %v2763_v50  ;;  %v3056_v37 = vmul.f32 %v2078_v56, %v2775_v52  ;;  %v3059_v43 = vmul.f32 %v2078_v56, %v2787_v54 }
 0x2aa   : > { %v3063_v47 = vmul.f32 %v2078_v56, %v2799_v58  ;;  %v3066_v41 = vmul.f32 %v2078_v56, %v2811_v59  ;;  %v3069_v46 = vmul.f32 %v2078_v56, %v2823_v63  ;;  %v3072_v20 = vmul.f32 %v2078_v56, %v2835_v6 }
 0x2ab   : > { %v3075_v50 = vmul.f32 %v2078_v56, %v2847_v10  ;;  %v3078_v52 = vmul.f32 %v2078_v56, %v2859_v11  ;;  %v3081_v54 = vmul.f32 %v2078_v56, %v2871_v15  ;;  %v3084_v58 = vmul.f32 %v2078_v56, %v2883_v22 }
 0x2ac   : > { %v3087_v59 = vmul.f32 %v2078_v56, %v2895_v26  ;;  %v3090_v63 = vmul.f32 %v2078_v56, %v2907_v27  ;;  %v3093_v6 = vmul.f32 %v2078_v56, %v2919_v30  ;;  %v3096_v10 = vmul.f32 %v2078_v56, %v2931_v34  ;;  %v2080_v27 = vpop.eup %2079 }
 0x2ad   : > { %v3099_v11 = vmul.f32 %v2078_v56, %v2943_v61  ;;  %v3102_v15 = vmul.f32 %v2078_v56, %v2955_v48  ;;  %v3105_v22 = vmul.f32 %v2078_v56, %v2967_v45  ;;  %v3108_v26 = vmul.f32 %v2078_v56, %v2979_v16 }
 0x2ae   : > { %v1765_v32 = vmax.f32 %v1701_v28, 0.0  ;;  %v1766_v33 = vmax.f32 %v1702_v1, 0.0  ;;  %v1767_v30 = vmax.f32 %v1703_v49, 0.0  ;;  %v1768_v57 = vmax.f32 %v1704_v0, 0.0 }
 0x2af   : > { %v3111_v34 = vmul.f32 %v2080_v27, %v3462_v44  ;;  %v3114_v61 = vmul.f32 %v2080_v27, %v3463_v31  ;;  %v3117_v48 = vmul.f32 %v2080_v27, %v2685_v42  ;;  %v3120_v45 = vmul.f32 %v2080_v27, %v2699_v12  ;;  %v3473_v31 = vld [vmem:[#allocation10_spill] sm:$0xff] }
 0x2b0   : > { %v3123_v16 = vmul.f32 %v2080_v27, %v2709_v55  ;;  %v3126_v56 = vmul.f32 %v2080_v27, %v2721_v17  ;;  %v3129_v49 = vmul.f32 %v2080_v27, %v2733_v24  ;;  %v3132_v28 = vmul.f32 %v2080_v27, %v2745_v39  ;;  %1829 = vst [vmem:[%s3134_s5] sm:$0xff] %v1765_v32 }
 0x2b1   : > { %1830 = vst [vmem:[%s3134_s5 + $0x8] sm:$0xff] %v1766_v33  ;;  %1831 = vst [vmem:[%s3134_s5 + $0x10] sm:$0xff] %v1767_v30  ;;  %v3141_v42 = vmul.f32 %v2080_v27, %v2757_v51  ;;  %v3144_v17 = vmul.f32 %v2080_v27, %v2769_v9  ;;  %v3147_v12 = vmul.f32 %v2080_v27, %v2781_v62  ;;  %v3464_v51 = vld [vmem:[#allocation23_spill] sm:$0xff]  ;;  %v3465_v9 = vld [vmem:[#allocation24_spill] sm:$0xff] }
 0x2b2   : > { %1832 = vst [vmem:[%s3134_s5 + $0x18] sm:$0xff] %v1768_v57  ;;  %v3150_v55 = vmul.f32 %v2080_v27, %v2793_v2  ;;  %v3153_v24 = vmul.f32 %v2080_v27, %v2805_v3  ;;  %v3156_v39 = vmul.f32 %v2080_v27, %v2817_v7  ;;  %v3159_v1 = vmul.f32 %v2080_v27, %v2829_v14  ;;  %v3467_v62 = vld [vmem:[#allocation25_spill] sm:$0xff]  ;;  %v3468_v2 = vld [vmem:[#allocation26_spill] sm:$0xff]  ;;  %v3469_v3 = vld [vmem:[#allocation27_spill] sm:$0xff] }
 0x2b3   : > { %v3162_v0 = vmul.f32 %v2080_v27, %v3464_v51  ;;  %v3165_v5 = vmul.f32 %v2080_v27, %v3465_v9  ;;  %v3168_v32 = vmul.f32 %v2080_v27, %v3467_v62  ;;  %v3171_v33 = vmul.f32 %v2080_v27, %v3468_v2  ;;  %v3470_v7 = vld [vmem:[#allocation28_spill] sm:$0xff]  ;;  %v3471_v14 = vld [vmem:[#allocation29_spill] sm:$0xff] }
 0x2b4   : > { %v3174_v30 = vmul.f32 %v2080_v27, %v3469_v3  ;;  %v3177_v57 = vmul.f32 %v2080_v27, %v3470_v7  ;;  %v3180_v44 = vmul.f32 %v2080_v27, %v3471_v14  ;;  %v3183_v51 = vmul.f32 %v2080_v27, %v3473_v31  ;;  %v3475_v9 = vld [vmem:[#allocation8_spill] sm:$0xff]  ;;  %v3478_v31 = vld [vmem:[#allocation9_spill] sm:$0xff] }
 0x2b5   : > { %3466 = vst [vmem:[#allocation16_spill] sm:$0xff] %v3165_v5  ;;  %v3186_v5 = vmul.f32 %v2080_v27, %v3475_v9  ;;  %v3189_v62 = vmul.f32 %v2080_v27, %v2949_v38  ;;  %v3192_v2 = vmul.f32 %v2080_v27, %v2961_v18  ;;  %v3195_v3 = vmul.f32 %v2080_v27, %v2973_v23  ;;  %v3476_v14 = vld [vmem:[#allocation12_spill] sm:$0xff]  ;;  %v3480_v9 = vld [vmem:[#allocation11_spill] sm:$0xff] }
 0x2b6   : > { %3472 = vst [vmem:[#allocation13_spill] sm:$0xff] %v3180_v44  ;;  %3474 = vst [vmem:[#allocation14_spill] sm:$0xff] %v3183_v51  ;;  %v3198_v7 = vmul.f32 %v2080_v27, %v2985_v19  ;;  %v3201_v44 = vmul.f32 %v2080_v27, %v3476_v14  ;;  %v3204_v51 = vmul.f32 %v2080_v27, %v3478_v31  ;;  %v1769_v23 = vmax.f32 %v3026_v60, 0.0 }
 0x2b7   : > { %v3207_v38 = vmul.f32 %v2080_v27, %v3480_v9  ;;  %v3210_v18 = vmul.f32 %v2080_v27, %v3013_v21  ;;  %v1770_v19 = vmax.f32 %v3029_v25, 0.0  ;;  %v1771_v14 = vmax.f32 %v3032_v29, 0.0 }
 0x2b8   : > { %3477 = vst [vmem:[#allocation15_spill] sm:$0xff] %v3201_v44  ;;  %3479 = vst [vmem:[#allocation17_spill] sm:$0xff] %v3204_v51  ;;  %v1772_v44 = vmax.f32 %v3035_v53, 0.0  ;;  %v1773_v31 = vmax.f32 %v3038_v13, 0.0  ;;  %v1774_v51 = vmax.f32 %v3041_v4, 0.0  ;;  %v1775_v9 = vmax.f32 %v3044_v35, 0.0 }
 0x2b9   : > { %v1776_v21 = vmax.f32 %v3047_v36, 0.0  ;;  %v1777_v60 = vmax.f32 %v3050_v40, 0.0  ;;  %v1778_v25 = vmax.f32 %v3053_v8, 0.0  ;;  %v1779_v29 = vmax.f32 %v3056_v37, 0.0  ;;  %1833 = vst [vmem:[%s3134_s5 + $0x20] sm:$0xff] %v1769_v23  ;;  %1834 = vst [vmem:[%s3134_s5 + $0x28] sm:$0xff] %v1770_v19 }
 0x2ba   : > { %v1780_v53 = vmax.f32 %v3059_v43, 0.0  ;;  %1835 = vst [vmem:[%s3134_s5 + $0x30] sm:$0xff] %v1771_v14  ;;  %1836 = vst [vmem:[%s3134_s5 + $0x38] sm:$0xff] %v1772_v44  ;;  %v1781_v13 = vmax.f32 %v3063_v47, 0.0  ;;  %v1782_v4 = vmax.f32 %v3066_v41, 0.0  ;;  %v1783_v35 = vmax.f32 %v3069_v46, 0.0 }
 0x2bb   : > { %v1784_v36 = vmax.f32 %v3072_v20, 0.0  ;;  %1837 = vst [vmem:[%s3134_s5 + $0x40] sm:$0xff] %v1773_v31  ;;  %1838 = vst [vmem:[%s3134_s5 + $0x48] sm:$0xff] %v1774_v51  ;;  %v1785_v40 = vmax.f32 %v3075_v50, 0.0  ;;  %v1786_v8 = vmax.f32 %v3078_v52, 0.0  ;;  %v1787_v37 = vmax.f32 %v3081_v54, 0.0 }
 0x2bc   : > { %1839 = vst [vmem:[%s3134_s5 + $0x50] sm:$0xff] %v1775_v9  ;;  %1840 = vst [vmem:[%s3134_s5 + $0x58] sm:$0xff] %v1776_v21  ;;  %v1788_v43 = vmax.f32 %v3084_v58, 0.0  ;;  %v1789_v47 = vmax.f32 %v3087_v59, 0.0  ;;  %v1790_v41 = vmax.f32 %v3090_v63, 0.0  ;;  %v1791_v46 = vmax.f32 %v3093_v6, 0.0 }
 0x2bd   : > { %1841 = vst [vmem:[%s3134_s5 + $0x60] sm:$0xff] %v1777_v60  ;;  %1842 = vst [vmem:[%s3134_s5 + $0x68] sm:$0xff] %v1778_v25  ;;  %v1792_v20 = vmax.f32 %v3096_v10, 0.0  ;;  %v1793_v50 = vmax.f32 %v3099_v11, 0.0  ;;  %v1794_v52 = vmax.f32 %v3102_v15, 0.0  ;;  %v1795_v54 = vmax.f32 %v3105_v22, 0.0 }
 0x2be   : > { %1843 = vst [vmem:[%s3134_s5 + $0x70] sm:$0xff] %v1779_v29  ;;  %1844 = vst [vmem:[%s3134_s5 + $0x78] sm:$0xff] %v1780_v53  ;;  %v1796_v58 = vmax.f32 %v3108_v26, 0.0  ;;  %v1797_v59 = vmax.f32 %v3111_v34, 0.0  ;;  %v1798_v63 = vmax.f32 %v3114_v61, 0.0  ;;  %v1799_v6 = vmax.f32 %v3117_v48, 0.0 }
 0x2bf   : > { %1845 = vst [vmem:[%s3134_s5 + $0x80] sm:$0xff] %v1781_v13  ;;  %1846 = vst [vmem:[%s3134_s5 + $0x88] sm:$0xff] %v1782_v4  ;;  %v1800_v10 = vmax.f32 %v3120_v45, 0.0  ;;  %v1801_v11 = vmax.f32 %v3123_v16, 0.0  ;;  %v1802_v15 = vmax.f32 %v3126_v56, 0.0  ;;  %v1803_v22 = vmax.f32 %v3129_v49, 0.0 }
 0x2c0   : > { %1847 = vst [vmem:[%s3134_s5 + $0x90] sm:$0xff] %v1783_v35  ;;  %1848 = vst [vmem:[%s3134_s5 + $0x98] sm:$0xff] %v1784_v36  ;;  %v1804_v26 = vmax.f32 %v3132_v28, 0.0  ;;  %v1805_v27 = vmax.f32 %v3141_v42, 0.0  ;;  %v1806_v34 = vmax.f32 %v3144_v17, 0.0  ;;  %v1807_v61 = vmax.f32 %v3147_v12, 0.0 }
 0x2c1   : > { %1849 = vst [vmem:[%s3134_s5 + $0xa0] sm:$0xff] %v1785_v40  ;;  %1850 = vst [vmem:[%s3134_s5 + $0xa8] sm:$0xff] %v1786_v8  ;;  %v1808_v48 = vmax.f32 %v3150_v55, 0.0  ;;  %v1809_v45 = vmax.f32 %v3153_v24, 0.0  ;;  %v1810_v16 = vmax.f32 %v3156_v39, 0.0  ;;  %v1811_v56 = vmax.f32 %v3159_v1, 0.0 }
 0x2c2   : > { %1851 = vst [vmem:[%s3134_s5 + $0xb0] sm:$0xff] %v1787_v37  ;;  %1852 = vst [vmem:[%s3134_s5 + $0xb8] sm:$0xff] %v1788_v43  ;;  %v1812_v49 = vmax.f32 %v3162_v0, 0.0  ;;  %v3481_v28 = vld [vmem:[#allocation16_spill] sm:$0xff]  ;;  %v1814_v17 = vmax.f32 %v3168_v32, 0.0  ;;  %v1815_v12 = vmax.f32 %v3171_v33, 0.0 }
 0x2c3   : > { %1853 = vst [vmem:[%s3134_s5 + $0xc0] sm:$0xff] %v1789_v47  ;;  %1854 = vst [vmem:[%s3134_s5 + $0xc8] sm:$0xff] %v1790_v41  ;;  %v1813_v42 = vmax.f32 %v3481_v28, 0.0  ;;  %v1816_v55 = vmax.f32 %v3174_v30, 0.0  ;;  %v1817_v24 = vmax.f32 %v3177_v57, 0.0  ;;  %v3482_v39 = vld [vmem:[#allocation13_spill] sm:$0xff] }
 0x2c4   : > { %1855 = vst [vmem:[%s3134_s5 + $0xd0] sm:$0xff] %v1791_v46  ;;  %1856 = vst [vmem:[%s3134_s5 + $0xd8] sm:$0xff] %v1792_v20  ;;  %v1818_v1 = vmax.f32 %v3482_v39, 0.0  ;;  %v3483_v0 = vld [vmem:[#allocation14_spill] sm:$0xff]  ;;  %v1820_v32 = vmax.f32 %v3186_v5, 0.0  ;;  %v1821_v33 = vmax.f32 %v3189_v62, 0.0 }
 0x2c5   : > { %1857 = vst [vmem:[%s3134_s5 + $0xe0] sm:$0xff] %v1793_v50  ;;  %1858 = vst [vmem:[%s3134_s5 + $0xe8] sm:$0xff] %v1794_v52  ;;  %v1819_v44 = vmax.f32 %v3483_v0, 0.0  ;;  %v1822_v30 = vmax.f32 %v3192_v2, 0.0  ;;  %v1823_v57 = vmax.f32 %v3195_v3, 0.0  ;;  %v1824_v51 = vmax.f32 %v3198_v7, 0.0 }
 0x2c6   : > { %1859 = vst [vmem:[%s3134_s5 + $0xf0] sm:$0xff] %v1795_v54  ;;  %1860 = vst [vmem:[%s3134_s5 + $0xf8] sm:$0xff] %v1796_v58  ;;  %v3484_v5 = vld [vmem:[#allocation15_spill] sm:$0xff]  ;;  %v3485_v2 = vld [vmem:[#allocation17_spill] sm:$0xff]  ;;  %v1827_v7 = vmax.f32 %v3207_v38, 0.0  ;;  %v1828_v23 = vmax.f32 %v3210_v18, 0.0 }
 0x2c7   : > { %1861 = vst [vmem:[%s3134_s5 + $0x100] sm:$0xff] %v1797_v59  ;;  %1862 = vst [vmem:[%s3134_s5 + $0x108] sm:$0xff] %v1798_v63  ;;  %v1825_v62 = vmax.f32 %v3484_v5, 0.0  ;;  %v1826_v3 = vmax.f32 %v3485_v2, 0.0 }
 0x2c8   : > { %1863 = vst [vmem:[%s3134_s5 + $0x110] sm:$0xff] %v1799_v6  ;;  %1864 = vst [vmem:[%s3134_s5 + $0x118] sm:$0xff] %v1800_v10 }
 0x2c9   : > { %1865 = vst [vmem:[%s3134_s5 + $0x120] sm:$0xff] %v1801_v11  ;;  %1866 = vst [vmem:[%s3134_s5 + $0x128] sm:$0xff] %v1802_v15 }
 0x2ca   : > { %1867 = vst [vmem:[%s3134_s5 + $0x130] sm:$0xff] %v1803_v22  ;;  %1868 = vst [vmem:[%s3134_s5 + $0x138] sm:$0xff] %v1804_v26 }
 0x2cb   : > { %1869 = vst [vmem:[%s3134_s5 + $0x140] sm:$0xff] %v1805_v27  ;;  %1870 = vst [vmem:[%s3134_s5 + $0x148] sm:$0xff] %v1806_v34 }
 0x2cc   : > { %1871 = vst [vmem:[%s3134_s5 + $0x150] sm:$0xff] %v1807_v61  ;;  %1872 = vst [vmem:[%s3134_s5 + $0x158] sm:$0xff] %v1808_v48 }
 0x2cd   : > { %1873 = vst [vmem:[%s3134_s5 + $0x160] sm:$0xff] %v1809_v45  ;;  %1874 = vst [vmem:[%s3134_s5 + $0x168] sm:$0xff] %v1810_v16 }
 0x2ce   : > { %1875 = vst [vmem:[%s3134_s5 + $0x170] sm:$0xff] %v1811_v56  ;;  %1876 = vst [vmem:[%s3134_s5 + $0x178] sm:$0xff] %v1812_v49 }
 0x2cf   : > { %1877 = vst [vmem:[%s3134_s5 + $0x180] sm:$0xff] %v1813_v42  ;;  %1878 = vst [vmem:[%s3134_s5 + $0x188] sm:$0xff] %v1814_v17 }
 0x2d0   : > { %1879 = vst [vmem:[%s3134_s5 + $0x190] sm:$0xff] %v1815_v12  ;;  %1880 = vst [vmem:[%s3134_s5 + $0x198] sm:$0xff] %v1816_v55 }
 0x2d1   : > { %1881 = vst [vmem:[%s3134_s5 + $0x1a0] sm:$0xff] %v1817_v24  ;;  %1882 = vst [vmem:[%s3134_s5 + $0x1a8] sm:$0xff] %v1818_v1 }
 0x2d2   : > { %1883 = vst [vmem:[%s3134_s5 + $0x1b0] sm:$0xff] %v1819_v44  ;;  %1884 = vst [vmem:[%s3134_s5 + $0x1b8] sm:$0xff] %v1820_v32 }
 0x2d3   : > { %1885 = vst [vmem:[%s3134_s5 + $0x1c0] sm:$0xff] %v1821_v33  ;;  %1886 = vst [vmem:[%s3134_s5 + $0x1c8] sm:$0xff] %v1822_v30 }
 0x2d4   : > { %1887 = vst [vmem:[%s3134_s5 + $0x1d0] sm:$0xff] %v1823_v57  ;;  %1888 = vst [vmem:[%s3134_s5 + $0x1d8] sm:$0xff] %v1824_v51 }
 0x2d5   : > { %1889 = vst [vmem:[%s3134_s5 + $0x1e0] sm:$0xff] %v1825_v62  ;;  %1890 = vst [vmem:[%s3134_s5 + $0x1e8] sm:$0xff] %v1826_v3 }
 0x2d6   : > { %1891 = vst [vmem:[%s3134_s5 + $0x1f0] sm:$0xff] %v1827_v7  ;;  %1892 = vst [vmem:[%s3134_s5 + $0x1f8] sm:$0xff] %v1828_v23 }
 0x2d7   : > { %2122 = shalt.err (!%p2119_p10)
}
 0x2d8   : > { %s2123_s26 = scalar_lea.hbm %s3321_s14, 8192  ;;  %s2127_s28 = scalar_lea.hbm %s3384_s2, 16384 }
 0x2d9   : > { %p2124_p2 = scmp.ne.s32.totalorder %s3321_s14, %s2123_s26  ;;  %p2128_p7 = scmp.lt.s32.totalorder %s3321_s14, %s3384_s2 }
 0x2da   : > { %p2129_p0 = scmp.lt.s32.totalorder %s2127_s28, %s2123_s26 }
 0x2db   : > { %p2125_p4 = pnand %p2124_p2, %p3486_p12 }
 0x2dc   : > { %p2130_p6 = por %p2129_p0, %p2128_p7 }
 0x2dd   : > { %p2126_p9 = pneg %p2125_p4 }
 0x2df   : > { %p2131_p11 = pnand %p2130_p6, %p2126_p9 }
 0x2e1   : > { %2134 = shalt.err (!%p2131_p11)
}
 0x2e2   : > { %s2178_s3 = smov 4096   ;;  %s2179_s4 = smov 256  }
 0x2e3   : > { %2030 = dma.vmem_to_hbm [thread:$0]  (%p3486_p12), %s3323_s7, 8192, %s3321_s14, %s1894_s16, %s2178_s3, %s2178_s3, %s2179_s4  }
 0x2e4 PF: > { %s1922_s5 = sand.u32 1, %s2161_s9   ;;  %p3487_p13 = scmp.ne.s32.totalorder %s3417_s22, 0 }
 0x2e5   : > { %p3488_p1 = scmp.ge.s32.totalorder %s2173_s12, 2  ;;  %s1923_s6 = scalar_lea.sflag [#allocation4], %s1922_s5 }
 0x2e7   : > { %p2037_p3 = pnand %p3488_p1, %p3487_p13 }
 0x2e9   : > { %p2038_p5 = pneg %p2037_p3 }
 0x2eb   : > { %2156 = dma.done.wait (%p2038_p5), %s1923_s6, 8192  }
 0x2ec   : > { %2158 = vsyncadd (%p2038_p5), %s1923_s6, 4294959104  ;;  %p15_p8 = scmp.ge.s32.totalorder %s2220_s15, 4   ;;  %s3489_s9 = smov %s2165_s10 }
 0x2ed   : > { %s3490_s10 = smov %s2169_s11  ;;  %s3491_s11 = smov %s2232_s18 }
 0x2ee   : > { %s3492_s12 = smov %s2220_s15  ;;  %17 = sbr.rel (!%p15_p8) target bundleno = 5 (0x5), region = 73 }
 0x2f3   :  { %1928 = vsyncpa [#allocation3], 1 }
 0x2f4   :  { %1930 = vsyncpa [#allocation3 + $0x1], 1 }
 0x2f5   :  { %1931 = vsyncpa [#allocation4], 1 }
 0x2f6   :  { %1933 = vsyncpa [#allocation4 + $0x1], 1 }

</bundles_post_ra>
